<compile_context>
chip_gen: v5e
topology: v5e:2x2
jax: 0.10.0
libtpu: 0.0.40
codegen_flags: <defaults>
</compile_context>

<pallas_src>
import jax
import jax.numpy as jnp
from jax.experimental import pallas as pl
from jax.experimental.pallas import tpu as pltpu


def _tensor_product_kernel(x_ref, km_ref, m2t_ref, o_ref):
    """One grid step: project `bt` batch elements.

    x_ref  : (bt, d0*d1, d2)   input slab for this step
    km_ref : (o0*o1, d0*d1)    kron(m0, m1), resident in VMEM
    m2t_ref: (d2, o2p)         m2 transposed + lane-padded, resident in VMEM
    o_ref  : (bt, o0*o1, o2p)
    """
    bt, q, _ = x_ref.shape
    o2p = m2t_ref.shape[1]

    km = km_ref[...]
    m2t = m2t_ref[...]
    cdt = km.dtype

    # Downcast the first product for the second MXU matmul only when that matmul is
    # FLOP-dominant (o2p >= d0*d1); otherwise keep it f32 and run the (cheap) second
    # matmul at f32 MXU rate -- no extra VPU pass / rounding step.
    downcast_y = (cdt != jnp.float32) and (o2p >= q)
    if (not downcast_y) and m2t.dtype != jnp.float32:
        m2t = m2t.astype(jnp.float32)          # hoisted once per grid step

    def body(n, carry):
        # (P, Q) @ (Q, d2) -> (P, d2), f32 accumulation on the MXU
        y = jnp.dot(km, x_ref[n], preferred_element_type=jnp.float32)
        if downcast_y:
            y = y.astype(cdt)
        # (P, d2) @ (d2, o2p) -> (P, o2p), lane-dense N
        o = jnp.dot(y, m2t, preferred_element_type=jnp.float32)
        o_ref[n] = o.astype(o_ref.dtype)
        return carry

    jax.lax.fori_loop(0, bt, body, 0)


def tensor_product_layer(x, m0, m1, m2, *, block_b=None, compute_dtype=None,
                         out_dtype=None):
    """Pallas equivalent of tensor_product_layer.forward (3-D or 4-D input).

    out[n, a, b, c] = sum_{i,j,k} m0[a,i] m1[b,j] m2[c,k] x[n,i,j,k]

    compute_dtype=jnp.bfloat16 is the recommended mode for large inputs (the kernel
    is HBM-bandwidth bound at typical sizes); accumulation is always f32 on the MXU.
    """
    squeeze = x.ndim == 3
    if squeeze:
        x = x[None]
    assert x.ndim == 4, "input must be rank 3 or rank 4"
    B, d0, d1, d2 = x.shape
    o0, o1, o2 = m0.shape[0], m1.shape[0], m2.shape[0]
    assert m0.shape[1] == d0 and m1.shape[1] == d1 and m2.shape[1] == d2

    cdt = jnp.dtype(compute_dtype) if compute_dtype is not None else jnp.dtype(x.dtype)
    odt = jnp.dtype(out_dtype) if out_dtype is not None else jnp.dtype(x.dtype)
    P, Q = o0 * o1, d0 * d1

    # kron(m0, m1): km[a*o1 + b, i*d1 + j] = m0[a, i] * m1[b, j]  -> (P, Q).
    # Fuses the mode-0 and mode-1 products into one dense matmul with K = d0*d1.
    km = (m0.astype(jnp.float32)[:, None, :, None]
          * m1.astype(jnp.float32)[None, :, None, :]).reshape(P, Q).astype(cdt)

    # Lane-pad o2 to a multiple of 128 so the output slab is lane-dense (unmasked vst).
    o2p = o2 if o2 % 128 == 0 else ((o2 + 127) // 128) * 128
    m2t = m2.T.astype(cdt)                                 # (d2, o2)
    if o2p != o2:
        m2t = jnp.pad(m2t, ((0, 0), (0, o2p - o2)))        # zero columns -> exact result

    if jnp.dtype(x.dtype) != cdt:
        x = x.astype(cdt)
    x2 = x.reshape(B, Q, d2)                               # contiguous merge: free bitcast

    # --- generation-aware batch tiling -------------------------------------------
    try:
        vmem_cap = int(pltpu.get_tpu_info().vmem_capacity_bytes)
    except Exception:  # pragma: no cover - conservative fallback off-TPU
        vmem_cap = 128 * 2**20
    small_vmem = vmem_cap <= 64 * 2**20          # v7x-like: 64 MiB VMEM, 2 TensorCores
    n_cores = 2 if small_vmem else 1
    vmem_limit = (32 * 2**20) if small_vmem else (64 * 2**20)
    block_budget = (24 * 2**20) if small_vmem else (44 * 2**20)

    itemsize = cdt.itemsize
    resident = 2 * (P * Q + d2 * o2p) * itemsize           # double-buffered km / m2t
    interm = 2 * (P * d2 + P * o2p) * 4                    # f32 y / o live inside the loop
    per_b = 2 * (Q * d2 * itemsize + P * o2p * odt.itemsize)  # double-buffered x/out rows
    slab_b = Q * d2 * itemsize                              # input bytes per batch element

    if block_b is None:
        avail = max(block_budget - resident - interm, per_b)
        bt = max(1, avail // per_b)
        bt = min(bt, max(1, (4 * 2**20) // max(slab_b, 1)))   # ~4 MiB input slab / step
        bt = min(bt, B)
        # Keep enough grid steps for DMA/compute overlap (and TC balance on 2-TC chips).
        if n_cores == 2:
            desired = 4 if B >= 4 else min(B, 2)
        else:
            desired = 4 if B * slab_b >= 8 * 2**20 else 1
        if desired > 1:
            bt = max(1, min(bt, pl.cdiv(B, desired)))
    else:
        bt = max(1, min(int(block_b), B))

    nb = pl.cdiv(B, bt)   # no jnp.pad: Pallas clips the edge block; batch rows independent

    flops = 2 * B * (P * Q * d2 + P * d2 * o2p)
    bytes_accessed = (B * Q * d2 * itemsize
                      + B * P * o2p * odt.itemsize
                      + (P * Q + d2 * o2p) * itemsize)

    out = pl.pallas_call(
        _tensor_product_kernel,
        out_shape=jax.ShapeDtypeStruct((B, P, o2p), odt),
        grid_spec=pltpu.PrefetchScalarGridSpec(
            num_scalar_prefetch=0,
            grid=(nb,),
            in_specs=[
                pl.BlockSpec((bt, Q, d2), lambda b: (b, 0, 0)),
                pl.BlockSpec((P, Q), lambda b: (0, 0)),
                pl.BlockSpec((d2, o2p), lambda b: (0, 0)),
            ],
            out_specs=pl.BlockSpec((bt, P, o2p), lambda b: (b, 0, 0)),
        ),
        compiler_params=pltpu.CompilerParams(
            dimension_semantics=("parallel",),
            vmem_limit_bytes=vmem_limit),
        cost_estimate=pl.CostEstimate(
            flops=flops, transcendentals=0, bytes_accessed=bytes_accessed),
    )(x2, km, m2t)

    if o2p != o2:
        out = out[..., :o2]
    out = out.reshape(B, o0, o1, o2)                       # contiguous split: free bitcast
    if squeeze:
        out = out[0]
    return out


if __name__ == "__main__":
    key = jax.random.PRNGKey(0)
    k1, k2, k3, k4 = jax.random.split(key, 4)

    # Small shapes consistent with the module: 3 mode matrices + batched 4-D input.
    B = 2
    d0, d1, d2 = 8, 16, 128       # input "one-dimensional section" sizes
    o0, o1, o2 = 8, 8, 128        # projected sizes

    m0 = jax.random.normal(k1, (o0, d0), dtype=jnp.float32)
    m1 = jax.random.normal(k2, (o1, d1), dtype=jnp.float32)
    m2 = jax.random.normal(k3, (o2, d2), dtype=jnp.float32)
    x = jax.random.normal(k4, (B, d0, d1, d2), dtype=jnp.float32)

    ref = jnp.einsum("ai,bj,ck,nijk->nabc", m0, m1, m2, x)

    # 4-D (batched) branch, f32
    out = jax.block_until_ready(tensor_product_layer(x, m0, m1, m2))
    assert out.shape == (B, o0, o1, o2)
    assert jnp.allclose(out, ref, rtol=1e-3, atol=1e-3), "f32 batched mismatch"

    # 3-D (single tensor) branch
    out3 = jax.block_until_ready(tensor_product_layer(x[0], m0, m1, m2))
    assert out3.shape == (o0, o1, o2)
    assert jnp.allclose(out3, ref[0], rtol=1e-3, atol=1e-3), "f32 single mismatch"

    # Non-divisible batch: grid edge block is clipped (no jnp.pad HBM round trip).
    B2 = 6
    x2 = jax.random.normal(jax.random.PRNGKey(1), (B2, d0, d1, d2), dtype=jnp.float32)
    ref2 = jnp.einsum("ai,bj,ck,nijk->nabc", m0, m1, m2, x2)
    out2 = jax.block_until_ready(tensor_product_layer(x2, m0, m1, m2, block_b=4))
    assert out2.shape == (B2, o0, o1, o2)
    assert jnp.allclose(out2, ref2, rtol=1e-3, atol=1e-3), "clipped-edge batch mismatch"

    # o2 not a multiple of 128: lane-padded weights + post-slice, still exact.
    o2b = 96
    m2b = jax.random.normal(jax.random.PRNGKey(2), (o2b, d2), dtype=jnp.float32)
    ref3 = jnp.einsum("ai,bj,ck,nijk->nabc", m0, m1, m2b, x)
    out_np = jax.block_until_ready(tensor_product_layer(x, m0, m1, m2b))
    assert out_np.shape == (B, o0, o1, o2b)
    assert jnp.allclose(out_np, ref3, rtol=1e-3, atol=1e-3), "lane-padded o2 mismatch"

    # bf16 compute path (recommended mem-bound mode); looser tolerance vs f32 ref.
    out_bf16 = jax.block_until_ready(
        tensor_product_layer(x.astype(jnp.bfloat16), m0.astype(jnp.bfloat16),
                             m1.astype(jnp.bfloat16), m2.astype(jnp.bfloat16)))
    err = float(jnp.max(jnp.abs(out_bf16.astype(jnp.float32) - ref))
                / (jnp.max(jnp.abs(ref)) + 1e-12))
    assert err < 3e-2, f"bf16 path error too large: {err}"

    print("KERNEL_OK")
</pallas_src>

<mosaic_0001>
module attributes {stable_mosaic.version = 11 : i64} {
  func.func @_tensor_product_kernel(%arg0: i32, %arg1: memref<2x128x128xf32, #tpu.memory_space<vmem>>, %arg2: memref<64x128xf32, #tpu.memory_space<vmem>>, %arg3: memref<128x128xf32, #tpu.memory_space<vmem>>, %arg4: memref<2x64x128xf32, #tpu.memory_space<vmem>>) attributes {dimension_semantics = [#tpu.dimension_semantics<parallel>], iteration_bounds = array<i64: 1>, scalar_prefetch = 0 : i64, scratch_operands = 0 : i64, tpu.core_type = #tpu.core_type<tc>, window_params = [{transform_indices = @transform_0, window_bounds = array<i64: 2, 128, 128>}, {pipeline_mode = #tpu.pipeline_mode<synchronous>, transform_indices = @transform_1, window_bounds = array<i64: 64, 128>}, {pipeline_mode = #tpu.pipeline_mode<synchronous>, transform_indices = @transform_2, window_bounds = array<i64: 128, 128>}, {transform_indices = @transform_3, window_bounds = array<i64: 2, 64, 128>}]} {
    %c0 = arith.constant 0 : index
    %c0_0 = arith.constant 0 : index
    %0 = vector.load %arg2[%c0, %c0_0] : memref<64x128xf32, #tpu.memory_space<vmem>>, vector<64x128xf32>
    %c0_1 = arith.constant 0 : index
    %c0_2 = arith.constant 0 : index
    %1 = vector.load %arg3[%c0_1, %c0_2] : memref<128x128xf32, #tpu.memory_space<vmem>>, vector<128x128xf32>
    %c0_i32 = arith.constant 0 : i32
    %c2_i32 = arith.constant 2 : i32
    %2 = arith.addi %c0_i32, %c2_i32 : i32
    %c1_i32 = arith.constant 1 : i32
    scf.for %arg5 = %c0_i32 to %2 step %c1_i32  : i32 {
      %3 = arith.index_cast %arg5 : i32 to index
      %c0_4 = arith.constant 0 : index
      %c0_5 = arith.constant 0 : index
      %4 = vector.load %arg1[%3, %c0_4, %c0_5] : memref<2x128x128xf32, #tpu.memory_space<vmem>>, vector<1x128x128xf32>
      %5 = vector.shape_cast %4 : vector<1x128x128xf32> to vector<128x128xf32>
      %cst = arith.constant dense<0.000000e+00> : vector<64x128xf32>
      %6 = tpu.matmul %0, %5, %cst {dimension_numbers = #tpu.dot_dimension_numbers<[1], [0], [0], [1], [0, 0, 1, 1], [], []>} : vector<64x128xf32>, vector<128x128xf32>, vector<64x128xf32> -> vector<64x128xf32>
      %cst_6 = arith.constant dense<0.000000e+00> : vector<64x128xf32>
      %7 = tpu.matmul %6, %1, %cst_6 {dimension_numbers = #tpu.dot_dimension_numbers<[1], [0], [0], [1], [0, 0, 1, 1], [], []>} : vector<64x128xf32>, vector<128x128xf32>, vector<64x128xf32> -> vector<64x128xf32>
      %8 = arith.index_cast %arg5 : i32 to index
      %c0_7 = arith.constant 0 : index
      %c0_8 = arith.constant 0 : index
      %9 = vector.load %arg4[%8, %c0_7, %c0_8] : memref<2x64x128xf32, #tpu.memory_space<vmem>>, vector<1x64x128xf32>
      %10 = vector.shape_cast %9 : vector<1x64x128xf32> to vector<64x128xf32>
      %11 = vector.shape_cast %7 : vector<64x128xf32> to vector<1x64x128xf32>
      tpu.vector_store %arg4[%8, %c0_7, %c0_8], %11 {strides = array<i32>} : memref<2x64x128xf32, #tpu.memory_space<vmem>>, vector<1x64x128xf32>,
    }
    %c2_i32_3 = arith.constant 2 : i32
    return
  }
  func.func @transform_0(%arg0: i32) -> (i32, i32, i32) {
    %c0_i32 = arith.constant 0 : i32
    %c0_i32_0 = arith.constant 0 : i32
    %c0_i32_1 = arith.constant 0 : i32
    return %arg0, %c0_i32, %c0_i32_0 : i32, i32, i32
  }
  func.func @transform_1(%arg0: i32) -> (i32, i32) {
    %c0_i32 = arith.constant 0 : i32
    %c0_i32_0 = arith.constant 0 : i32
    %c0_i32_1 = arith.constant 0 : i32
    return %c0_i32, %c0_i32_0 : i32, i32
  }
  func.func @transform_2(%arg0: i32) -> (i32, i32) {
    %c0_i32 = arith.constant 0 : i32
    %c0_i32_0 = arith.constant 0 : i32
    %c0_i32_1 = arith.constant 0 : i32
    return %c0_i32, %c0_i32_0 : i32, i32
  }
  func.func @transform_3(%arg0: i32) -> (i32, i32, i32) {
    %c0_i32 = arith.constant 0 : i32
    %c0_i32_0 = arith.constant 0 : i32
    %c0_i32_1 = arith.constant 0 : i32
    return %arg0, %c0_i32, %c0_i32_0 : i32, i32, i32
  }
}

</mosaic_0001>

<bundles_post_ra>
// kernel: tpu_custom_call.1
= control target key start
LH: loop header
LB: loop body
LE: loop exit
PB: predicated region body
PF: predicated region fallthrough
CT: control target
= control target key end

     0   :  { %8 = vsyncpa [#allocation3], 0  ;;  %s555_s0 = inlined_call_operand.hbm [shape: f32[2,128,128], index: 0, kind: input, shape index: {}]   ;;  %s556_s1 = inlined_call_operand.hbm [shape: f32[64,128], index: 1, kind: input, shape index: {}]   ;;  %s557_s2 = inlined_call_operand.hbm [shape: f32[128,128], index: 2, kind: input, shape index: {}]   ;;  %s558_s3 = inlined_call_operand.hbm [shape: f32[2,64,128], index: 3, kind: output, shape index: {}]  }
   0x1   :  { %9 = vsyncpa [#allocation6], 0 }
   0x2   :  { %10 = vsyncpa [#allocation4], 0  ;;  %s28_s14 = sshll.u32 %s556_s1, 4  ;;  %s389_s15 = smov [#allocation5]   ;;  %s29_s14 = int_to_ptr.hbm [resolvable:$true] %s28_s14 }
   0x3   :  { %s30_s16 = sshll.u32 %s389_s15, 4  ;;  %s15_s19 = sshll.u32 %s555_s0, 4  ;;  %s31_s16 = int_to_ptr.vmem [resolvable:$true] %s30_s16  ;;  %s16_s19 = int_to_ptr.hbm [resolvable:$true] %s15_s19 }
   0x4   :  { %s390_s20 = smov 128   ;;  %s391_s21 = smov 8  }
   0x5   :  { %36 = dma.hbm_to_vmem [thread:$0]  %s29_s14, 1024, %s31_s16, [#allocation6], %s390_s20, %s390_s20, %s391_s21  }
   0x6   :  { %s392_s22 = smov [#allocation2]   ;;  %s41_s1 = sshll.u32 %s557_s2, 4  ;;  %s42_s1 = int_to_ptr.hbm [resolvable:$true] %s41_s1 }
   0x7   :  { %s17_s23 = sshll.u32 %s392_s22, 4  ;;  %s393_s0 = smov [#allocation7]   ;;  %s18_s23 = int_to_ptr.vmem [resolvable:$true] %s17_s23 }
   0x8   :  { %23 = dma.hbm_to_vmem [thread:$0]  %s16_s19, 4096, %s18_s23, [#allocation3], %s390_s20, %s390_s20, %s391_s21  }
   0x9   :  { %s43_s26 = sshll.u32 %s393_s0, 4  ;;  %s44_s26 = int_to_ptr.vmem [resolvable:$true] %s43_s26 }
   0xa   :  { %49 = dma.hbm_to_vmem [thread:$0]  %s42_s1, 2048, %s44_s26, [#allocation6], %s390_s20, %s390_s20, %s391_s21  }
   0xb   :  { %379 = dma.done.wait [#allocation3], 4096  }
   0xc   :  { %380 = vsyncadd [#allocation3], 4294963200 }
   0xd   :  { %381 = dma.done.wait [#allocation6], 3072  }
   0xe   :  { %382 = vsyncadd [#allocation6], 4294964224  ;;  %v433_v0 = vld [vmem:[#allocation5] sm:$0xff]  ;;  %v435_v1 = vld [vmem:[#allocation5 + $0x8] sm:$0xff]  ;;  %s481_s2 = smov 0  }
   0xf   :  { %v437_v2 = vld [vmem:[#allocation5 + $0x10] sm:$0xff]  ;;  %v439_v3 = vld [vmem:[#allocation5 + $0x18] sm:$0xff]  ;;  %v441_v4 = vld [vmem:[#allocation5 + $0x20] sm:$0xff] }
  0x10   :  { %v443_v5 = vld [vmem:[#allocation5 + $0x28] sm:$0xff]  ;;  %v445_v6 = vld [vmem:[#allocation5 + $0x30] sm:$0xff]  ;;  %v447_v7 = vld [vmem:[#allocation5 + $0x38] sm:$0xff] }
  0x11   :  { %v449_v8 = vld [vmem:[#allocation7] sm:$0xff]  ;;  %v451_v9 = vld [vmem:[#allocation7 + $0x8] sm:$0xff]  ;;  %v453_v10 = vld [vmem:[#allocation7 + $0x10] sm:$0xff] }
  0x12   :  { %v455_v11 = vld [vmem:[#allocation7 + $0x18] sm:$0xff]  ;;  %v457_v12 = vld [vmem:[#allocation7 + $0x20] sm:$0xff]  ;;  %v459_v13 = vld [vmem:[#allocation7 + $0x28] sm:$0xff] }
  0x13   :  { %v461_v14 = vld [vmem:[#allocation7 + $0x30] sm:$0xff]  ;;  %v463_v15 = vld [vmem:[#allocation7 + $0x38] sm:$0xff]  ;;  %v465_v16 = vld [vmem:[#allocation7 + $0x40] sm:$0xff] }
  0x14   :  { %v467_v17 = vld [vmem:[#allocation7 + $0x48] sm:$0xff]  ;;  %v469_v18 = vld [vmem:[#allocation7 + $0x50] sm:$0xff]  ;;  %v471_v19 = vld [vmem:[#allocation7 + $0x58] sm:$0xff] }
  0x15   :  { %v473_v20 = vld [vmem:[#allocation7 + $0x60] sm:$0xff]  ;;  %v475_v21 = vld [vmem:[#allocation7 + $0x68] sm:$0xff]  ;;  %v477_v22 = vld [vmem:[#allocation7 + $0x70] sm:$0xff] }
  0x16   :  { %v479_v23 = vld [vmem:[#allocation7 + $0x78] sm:$0xff] }
  0x17 LB: > { %249 = vmatpush.msra.mxu3 %v479_v23  ;;  %151 = vmatpush.msra.mxu1 %v479_v23  ;;  %s231_s27 = sshll.u32 %s387_s2, 7  ;;  %s232_s29 = sshll.u32 %s387_s2, 6  ;;  %s387_s2 = sphi %s481_s2, %s91_s2  }
  0x18   : > { %s491_s28 = scalar_lea.vmem [#allocation2], %s231_s27  ;;  %s193_s30 = scalar_lea.vmem [#allocation8], %s232_s29 }
  0x19   : > { %250 = vmatpush.msra.mxu3 %v477_v22  ;;  %152 = vmatpush.msra.mxu1 %v477_v22  ;;  %v109_v24 = vld [vmem:[%s491_s28 + $0x78] sm:$0xff]  ;;  %v108_v25 = vld [vmem:[%s491_s28 + $0x70] sm:$0xff]  ;;  %v107_v26 = vld [vmem:[%s491_s28 + $0x68] sm:$0xff]  ;;  %s91_s2 = sadd.s32 1, %s387_s2  }
  0x1a   : > { %233 = vmatpush.msra.mxu2 %v109_v24  ;;  %110 = vmatpush.msra.mxu0 %v109_v24  ;;  %v106_v27 = vld [vmem:[%s491_s28 + $0x60] sm:$0xff]  ;;  %v105_v28 = vld [vmem:[%s491_s28 + $0x58] sm:$0xff]  ;;  %v104_v29 = vld [vmem:[%s491_s28 + $0x50] sm:$0xff]  ;;  %p88_p0 = scmp.ge.s32.totalorder %s91_s2, 2  }
  0x1b   : > { %251 = vmatpush.msra.mxu3 %v475_v21  ;;  %153 = vmatpush.msra.mxu1 %v475_v21  ;;  %v103_v30 = vld [vmem:[%s491_s28 + $0x48] sm:$0xff]  ;;  %v102_v31 = vld [vmem:[%s491_s28 + $0x40] sm:$0xff]  ;;  %v101_v32 = vld [vmem:[%s491_s28 + $0x38] sm:$0xff]  ;;  %s208_s6 = sshll.u32 (%p88_p0), %s558_s3, 4  ;;  %s394_s7 = smov (%p88_p0), [#allocation8]   ;;  %s209_s6 = int_to_ptr.hbm [resolvable:$true] %s208_s6 }
  0x1c   : > { %234 = vmatpush.msra.mxu2 %v108_v25  ;;  %111 = vmatpush.msra.mxu0 %v108_v25  ;;  %v100_v33 = vld [vmem:[%s491_s28 + $0x30] sm:$0xff]  ;;  %v99_v34 = vld [vmem:[%s491_s28 + $0x28] sm:$0xff]  ;;  %v98_v35 = vld [vmem:[%s491_s28 + $0x20] sm:$0xff]  ;;  %s206_s8 = sshll.u32 (%p88_p0), %s394_s7, 4  ;;  %s207_s8 = int_to_ptr.vmem [resolvable:$true] %s206_s8 }
  0x1d   : > { %252 = vmatpush.msra.mxu3 %v473_v20  ;;  %154 = vmatpush.msra.mxu1 %v473_v20  ;;  %v97_v36 = vld [vmem:[%s491_s28 + $0x18] sm:$0xff]  ;;  %v96_v37 = vld [vmem:[%s491_s28 + $0x10] sm:$0xff]  ;;  %v95_v38 = vld [vmem:[%s491_s28 + $0x8] sm:$0xff] }
  0x1e   : > { %235 = vmatpush.msra.mxu2 %v107_v26  ;;  %112 = vmatpush.msra.mxu0 %v107_v26  ;;  %v94_v39 = vld [vmem:[%s491_s28] sm:$0xff] }
  0x1f   : > { %253 = vmatpush.msra.mxu3 %v471_v19  ;;  %155 = vmatpush.msra.mxu1 %v471_v19 }
  0x20   : > { %236 = vmatpush.msra.mxu2 %v106_v27  ;;  %113 = vmatpush.msra.mxu0 %v106_v27 }
  0x21   : > { %254 = vmatpush.msra.mxu3 %v469_v18  ;;  %156 = vmatpush.msra.mxu1 %v469_v18 }
  0x22   : > { %237 = vmatpush.msra.mxu2 %v105_v28  ;;  %114 = vmatpush.msra.mxu0 %v105_v28 }
  0x23   : > { %255 = vmatpush.msra.mxu3 %v467_v17  ;;  %157 = vmatpush.msra.mxu1 %v467_v17 }
  0x24   : > { %238 = vmatpush.msra.mxu2 %v104_v29  ;;  %115 = vmatpush.msra.mxu0 %v104_v29 }
  0x25   : > { %256 = vmatpush.msra.mxu3 %v465_v16  ;;  %158 = vmatpush.msra.mxu1 %v465_v16 }
  0x26   : > { %239 = vmatpush.msra.mxu2 %v103_v30  ;;  %116 = vmatpush.msra.mxu0 %v103_v30 }
  0x27   : > { %257 = vmatpush.msra.mxu3 %v463_v15  ;;  %159 = vmatpush.msra.mxu1 %v463_v15 }
  0x28   : > { %240 = vmatpush.msra.mxu2 %v102_v31  ;;  %117 = vmatpush.msra.mxu0 %v102_v31 }
  0x29   : > { %258 = vmatpush.msra.mxu3 %v461_v14  ;;  %160 = vmatpush.msra.mxu1 %v461_v14 }
  0x2a   : > { %241 = vmatpush.msra.mxu2 %v101_v32  ;;  %118 = vmatpush.msra.mxu0 %v101_v32 }
  0x2b   : > { %259 = vmatpush.msra.mxu3 %v459_v13  ;;  %161 = vmatpush.msra.mxu1 %v459_v13 }
  0x2c   : > { %242 = vmatpush.msra.mxu2 %v100_v33  ;;  %119 = vmatpush.msra.mxu0 %v100_v33 }
  0x2d   : > { %260 = vmatpush.msra.mxu3 %v457_v12  ;;  %162 = vmatpush.msra.mxu1 %v457_v12 }
  0x2e   : > { %243 = vmatpush.msra.mxu2 %v99_v34  ;;  %120 = vmatpush.msra.mxu0 %v99_v34 }
  0x2f   : > { %261 = vmatpush.msra.mxu3 %v455_v11  ;;  %163 = vmatpush.msra.mxu1 %v455_v11 }
  0x30   : > { %244 = vmatpush.msra.mxu2 %v98_v35  ;;  %121 = vmatpush.msra.mxu0 %v98_v35 }
  0x31   : > { %262 = vmatpush.msra.mxu3 %v453_v10  ;;  %164 = vmatpush.msra.mxu1 %v453_v10 }
  0x32   : > { %245 = vmatpush.msra.mxu2 %v97_v36  ;;  %122 = vmatpush.msra.mxu0 %v97_v36 }
  0x33   : > { %263 = vmatpush.msra.mxu3 %v451_v9  ;;  %165 = vmatpush.msra.mxu1 %v451_v9 }
  0x34   : > { %246 = vmatpush.msra.mxu2 %v96_v37  ;;  %123 = vmatpush.msra.mxu0 %v96_v37 }
  0x35   : > { %264 = vmatpush.msra.mxu3 %v449_v8  ;;  %166 = vmatpush.msra.mxu1 %v449_v8 }
  0x36   : > { %247 = vmatpush.msra.mxu2 %v95_v38  ;;  %124 = vmatpush.msra.mxu0 %v95_v38 }
  0x38   : > { %248 = vmatpush.msra.mxu2 %v94_v39  ;;  %125 = vmatpush.msra.mxu0 %v94_v39 }
  0x39   : > { %138 = vmatmul.f32.vlgmr.msra.gmra.mxu2 %v441_v4  ;;  %126 = vmatmul.f32.vlgmr.msra.gmra.mxu0 %v433_v0 }
  0x41   : > { %141 = vmatmul.f32.gmra.mxu2 %v443_v5  ;;  %129 = vmatmul.f32.gmra.mxu0 %v435_v1 }
  0x49   : > { %144 = vmatmul.f32.gmra.mxu2 %v445_v6  ;;  %132 = vmatmul.f32.gmra.mxu0 %v437_v2 }
  0x51   : > { %147 = vmatmul.f32.gmra.mxu2 %v447_v7  ;;  %135 = vmatmul.f32.gmra.mxu0 %v439_v3 }
  0xb6   : > { %v127_v40 = vpop.f32.mrf.mxu0 }
  0xb7   : > { %167 = vmatmul.f32.vlgmr.msra.gmra.mxu1 %v127_v40 }
  0xbc   : > { %v139_v41 = vpop.f32.mrf.mxu2 }
  0xbd   : > { %179 = vmatmul.f32.vlgmr.msra.gmra.mxu3 %v139_v41 }
  0xbe   : > { %v130_v42 = vpop.f32.mrf.mxu0 }
  0xbf   : > { %170 = vmatmul.f32.gmra.mxu1 %v130_v42 }
  0xc4   : > { %v142_v43 = vpop.f32.mrf.mxu2 }
  0xc5   : > { %182 = vmatmul.f32.gmra.mxu3 %v142_v43 }
  0xc6   : > { %v133_v44 = vpop.f32.mrf.mxu0 }
  0xc7   : > { %173 = vmatmul.f32.gmra.mxu1 %v133_v44 }
  0xcc   : > { %v145_v45 = vpop.f32.mrf.mxu2 }
  0xcd   : > { %185 = vmatmul.f32.gmra.mxu3 %v145_v45 }
  0xce   : > { %v136_v46 = vpop.f32.mrf.mxu0 }
  0xcf   : > { %176 = vmatmul.f32.gmra.mxu1 %v136_v46 }
  0xd4   : > { %v148_v47 = vpop.f32.mrf.mxu2 }
  0xd5   : > { %188 = vmatmul.f32.gmra.mxu3 %v148_v47 }
 0x134   : > { %v168_v48 = vpop.f32.mrf.mxu1 }
 0x135   : > { %194 = vst [vmem:[%s193_s30] sm:$0xff] %v168_v48 }
 0x13c   : > { %v171_v49 = vpop.f32.mrf.mxu1 }
 0x13d   : > { %195 = vst [vmem:[%s193_s30 + $0x8] sm:$0xff] %v171_v49 }
 0x140   : > { %v180_v50 = vpop.f32.mrf.mxu3 }
 0x141   : > { %198 = vst [vmem:[%s193_s30 + $0x20] sm:$0xff] %v180_v50 }
 0x144   : > { %v174_v51 = vpop.f32.mrf.mxu1 }
 0x145   : > { %196 = vst [vmem:[%s193_s30 + $0x10] sm:$0xff] %v174_v51 }
 0x148   : > { %v183_v52 = vpop.f32.mrf.mxu3 }
 0x149   : > { %199 = vst [vmem:[%s193_s30 + $0x28] sm:$0xff] %v183_v52 }
 0x14c   : > { %v177_v53 = vpop.f32.mrf.mxu1 }
 0x14d   : > { %197 = vst [vmem:[%s193_s30 + $0x18] sm:$0xff] %v177_v53 }
 0x150   : > { %v186_v54 = vpop.f32.mrf.mxu3 }
 0x151   : > { %200 = vst [vmem:[%s193_s30 + $0x30] sm:$0xff] %v186_v54 }
 0x155   :  { %90 = sbr.rel (!%p88_p0) target bundleno = 23 (0x17), region = 53 }
 0x158   : > { %v189_v55 = vpop.f32.mrf.mxu3 }
 0x159   : > { %201 = vst [vmem:[%s193_s30 + $0x38] sm:$0xff] %v189_v55 }
 0x15a   :  { %214 = dma.vmem_to_hbm [thread:$0]  %s207_s8, 2048, %s209_s6, [#allocation4], %s390_s20, %s390_s20, %s391_s21  }
 0x15b   :  { %383 = dma.done.wait [#allocation4], 2048  }
 0x15c   :  { %384 = vsyncadd [#allocation4], 4294965248 }
 0x15d   :  { %219 = vsyncpa [#allocation3], 1 }
 0x15e   :  { %220 = vsyncpa [#allocation6], 1 }
 0x15f   :  { %221 = vsyncpa [#allocation4], 1 }

</bundles_post_ra>
